<compile_context>
chip_gen: v7x
topology: tpu7x:2x2x1
jax: 0.10.0
libtpu: 0.0.40
codegen_flags: <defaults>
</compile_context>

<pallas_src>
import jax
import jax.numpy as jnp
from jax.experimental import pallas as pl
from jax.experimental.pallas import tpu as pltpu


def _wce_kernel(logits_ref, wps_ref, out_ref):
    """One batch tile: write partial sum_i w_i * logsumexp(x_i) to this tile's block."""
    x = logits_ref[...]                                        # (TN, C) native dtype
    row_max = jnp.max(x, axis=-1, keepdims=True)               # (TN, 1) native dtype
    shifted = (x - row_max).astype(jnp.float32)                # cast feeds exp chain
    sum_exp = jnp.sum(jnp.exp(shifted), axis=-1, keepdims=True)  # (TN, 1) f32
    lse = row_max.astype(jnp.float32) + jnp.log(sum_exp)       # (TN, 1) f32

    w = wps_ref[...]                                           # (TN, 1) f32, padded rows = 0
    partial = jnp.sum(w * lse, axis=(0, 1), keepdims=True)     # (1, 1)
    out_ref[...] = jnp.broadcast_to(partial[None], out_ref.shape)


def weighted_cross_entropy(logits, targets, class_weights, block_rows=None):
    """logits: (N, C) float (f32 or bf16); targets: (N,) int; class_weights: (C,) float."""
    n, c = logits.shape
    targets = targets.astype(jnp.int32)
    itemsize = jnp.dtype(logits.dtype).itemsize

    # O(N) pieces done in XLA (cheap gathers / sums), so the kernel is pure weighted LSE.
    w_per_sample = class_weights.astype(jnp.float32)[targets]                    # (N,)
    picked = jnp.take_along_axis(logits, targets[:, None], axis=-1)[:, 0]        # (N,)
    picked = picked.astype(jnp.float32)
    den = jnp.sum(w_per_sample)                 # NaN/Inf if total weight == 0 (matches PyTorch)
    wpicked = jnp.sum(w_per_sample * picked)

    # ---- generation-aware tile sizing ----
    try:
        vmem_cap = pltpu.get_tpu_info().vmem_capacity_bytes
    except Exception:
        vmem_cap = 128 * 1024 * 1024
    if vmem_cap <= 80 * 1024 * 1024:            # v7x-class: 64 MiB VMEM per TensorCore
        work_budget = 14 * 1024 * 1024
        vmem_limit = 40 * 1024 * 1024
    else:                                       # v5e / v6e: 128 MiB VMEM
        work_budget = 24 * 1024 * 1024
        vmem_limit = 72 * 1024 * 1024

    align = 16  # rows multiple of 16 so bf16 tiles are layout-legal (also fine for f32)
    if block_rows is None:
        # Per-row VMEM cost: double-buffered logits tile + double-buffered (TN,1) f32
        # weight column (~512 B/row once expanded into (8,128) tiles) + f32 exp temp.
        per_row = 2 * (c * itemsize + 512) + 2 * c * 4
        block_rows = max(align, min(32768, work_budget // per_row))
    block_rows = max(align, (int(block_rows) // align) * align)
    block_rows = min(block_rows, ((n + align - 1) // align) * align)

    # Pad N up to a tile multiple; padded rows get weight 0 -> contribute exactly 0.
    n_pad = ((n + block_rows - 1) // block_rows) * block_rows
    w2d = w_per_sample[:, None]
    if n_pad != n:
        pad = n_pad - n
        logits = jnp.pad(logits, ((0, pad), (0, 0)))
        w2d = jnp.pad(w2d, ((0, pad), (0, 0)))

    grid = (n_pad // block_rows,)

    cost = pl.CostEstimate(
        flops=4 * n_pad * c,
        transcendentals=n_pad * (c + 1),
        bytes_accessed=n_pad * c * itemsize + 4 * n_pad + grid[0] * 8 * 128 * 4,
    )

    partials = pl.pallas_call(
        _wce_kernel,
        out_shape=jax.ShapeDtypeStruct((grid[0], 8, 128), jnp.float32),
        grid=grid,
        in_specs=[
            pl.BlockSpec((block_rows, c), lambda i: (i, 0)),
            pl.BlockSpec((block_rows, 1), lambda i: (i, 0)),
        ],
        out_specs=pl.BlockSpec((1, 8, 128), lambda i: (i, 0, 0)),
        compiler_params=pltpu.CompilerParams(
            dimension_semantics=("parallel",),   # each tile writes its own block
            vmem_limit_bytes=vmem_limit,
        ),
        cost_estimate=cost,
    )(logits, w2d)

    num = jnp.sum(partials[:, 0, 0])
    return (num - wpicked) / den


if __name__ == "__main__":
    key = jax.random.PRNGKey(0)
    k1, k2, k3, k4, k5, k6 = jax.random.split(key, 6)

    def ref_loss(lg, tg, w):
        lg32 = lg.astype(jnp.float32)
        lse = jax.scipy.special.logsumexp(lg32, axis=-1)
        picked = jnp.take_along_axis(lg32, tg[:, None], axis=-1)[:, 0]
        ws = w[tg]
        return jnp.sum(ws * (lse - picked)) / jnp.sum(ws)

    # Test 1: small single-tile f32 case.
    N, C = 8, 16
    logits = jax.random.normal(k1, (N, C), dtype=jnp.float32)
    targets = jax.random.randint(k2, (N,), 0, C, dtype=jnp.int32)
    class_weights = jnp.linspace(0.5, 2.0, C, dtype=jnp.float32)

    loss = weighted_cross_entropy(logits, targets, class_weights)
    jax.block_until_ready(loss)
    ref = ref_loss(logits, targets, class_weights)
    assert jnp.allclose(loss, ref, atol=1e-5, rtol=1e-5), (loss, ref)

    # Test 2: ragged N with a multi-tile parallel grid (exercises padding + partials).
    N2, C2 = 40, 16
    logits2 = jax.random.normal(k3, (N2, C2), dtype=jnp.float32)
    targets2 = jax.random.randint(k4, (N2,), 0, C2, dtype=jnp.int32)
    loss2 = weighted_cross_entropy(logits2, targets2, class_weights, block_rows=16)
    jax.block_until_ready(loss2)
    ref2 = ref_loss(logits2, targets2, class_weights)
    assert jnp.allclose(loss2, ref2, atol=1e-5, rtol=1e-5), (loss2, ref2)

    # Test 3: bf16 logits on the wire (native-dtype max/subtract path), loose tolerance.
    N3, C3 = 32, 128
    logits3 = jax.random.normal(k5, (N3, C3), dtype=jnp.float32).astype(jnp.bfloat16)
    targets3 = jax.random.randint(k6, (N3,), 0, C3, dtype=jnp.int32)
    cw3 = jnp.linspace(0.5, 2.0, C3, dtype=jnp.float32)
    loss3 = weighted_cross_entropy(logits3, targets3, cw3)
    jax.block_until_ready(loss3)
    ref3 = ref_loss(logits3, targets3, cw3)
    assert jnp.allclose(loss3, ref3, atol=5e-2, rtol=5e-2), (loss3, ref3)

    print("KERNEL_OK")
</pallas_src>

<mosaic_0001>
module attributes {stable_mosaic.version = 11 : i64} {
  func.func @_wce_kernel(%arg0: i32, %arg1: memref<16x16xf32, #tpu.memory_space<vmem>>, %arg2: memref<16x1xf32, #tpu.memory_space<vmem>>, %arg3: memref<1x8x128xf32, #tpu.memory_space<vmem>>) attributes {dimension_semantics = [#tpu.dimension_semantics<parallel>], iteration_bounds = array<i64: 1>, scalar_prefetch = 0 : i64, scratch_operands = 0 : i64, tpu.core_type = #tpu.core_type<tc>, window_params = [{transform_indices = @transform_0, window_bounds = array<i64: 16, 16>}, {transform_indices = @transform_1, window_bounds = array<i64: 16, 1>}, {transform_indices = @transform_2, window_bounds = array<i64: 1, 8, 128>}]} {
    %c0 = arith.constant 0 : index
    %c0_0 = arith.constant 0 : index
    %0 = vector.load %arg1[%c0, %c0_0] : memref<16x16xf32, #tpu.memory_space<vmem>>, vector<16x16xf32>
    %cst = arith.constant dense<0xFF800000> : vector<16xf32>
    %1 = vector.multi_reduction <maximumf>, %0, %cst [1] : vector<16x16xf32> to vector<16xf32>
    %2 = vector.shape_cast %1 : vector<16xf32> to vector<16x1xf32>
    %3 = vector.broadcast %2 : vector<16x1xf32> to vector<16x16xf32>
    %4 = arith.subf %0, %3 : vector<16x16xf32>
    %5 = math.exp %4 : vector<16x16xf32>
    %cst_1 = arith.constant dense<0.000000e+00> : vector<16xf32>
    %6 = vector.multi_reduction <add>, %5, %cst_1 [1] : vector<16x16xf32> to vector<16xf32>
    %7 = vector.shape_cast %6 : vector<16xf32> to vector<16x1xf32>
    %8 = math.log %7 : vector<16x1xf32>
    %9 = arith.addf %2, %8 : vector<16x1xf32>
    %c0_2 = arith.constant 0 : index
    %c0_3 = arith.constant 0 : index
    %10 = vector.load %arg2[%c0_2, %c0_3] : memref<16x1xf32, #tpu.memory_space<vmem>>, vector<16x1xf32>
    %11 = arith.mulf %10, %9 : vector<16x1xf32>
    %12 = vector.shape_cast %11 : vector<16x1xf32> to vector<1x16x1xf32>
    %cst_4 = arith.constant dense<0.000000e+00> : vector<1xf32>
    %13 = vector.multi_reduction <add>, %12, %cst_4 [1, 2] : vector<1x16x1xf32> to vector<1xf32>
    %14 = vector.shape_cast %13 : vector<1xf32> to vector<1x1x1xf32>
    %15 = vector.extract %14[0, 0, 0] : f32 from vector<1x1x1xf32>
    %16 = vector.broadcast %15 : f32 to vector<1x1xf32>
    %17 = vector.shape_cast %16 : vector<1x1xf32> to vector<1x1x1xf32>
    %18 = vector.shape_cast %17 : vector<1x1x1xf32> to vector<1x1x1xf32>
    %19 = vector.broadcast %18 : vector<1x1x1xf32> to vector<1x8x128xf32>
    %c0_5 = arith.constant 0 : index
    %c0_6 = arith.constant 0 : index
    %c0_7 = arith.constant 0 : index
    %20 = vector.load %arg3[%c0_5, %c0_6, %c0_7] : memref<1x8x128xf32, #tpu.memory_space<vmem>>, vector<1x8x128xf32>
    tpu.vector_store %arg3[%c0_5, %c0_6, %c0_7], %19 {strides = array<i32>} : memref<1x8x128xf32, #tpu.memory_space<vmem>>, vector<1x8x128xf32>,
    return
  }
  func.func @transform_0(%arg0: i32) -> (i32, i32) {
    %c0_i32 = arith.constant 0 : i32
    %c0_i32_0 = arith.constant 0 : i32
    return %arg0, %c0_i32 : i32, i32
  }
  func.func @transform_1(%arg0: i32) -> (i32, i32) {
    %c0_i32 = arith.constant 0 : i32
    %c0_i32_0 = arith.constant 0 : i32
    return %arg0, %c0_i32 : i32, i32
  }
  func.func @transform_2(%arg0: i32) -> (i32, i32, i32) {
    %c0_i32 = arith.constant 0 : i32
    %c0_i32_0 = arith.constant 0 : i32
    %c0_i32_1 = arith.constant 0 : i32
    return %arg0, %c0_i32, %c0_i32_0 : i32, i32, i32
  }
}

</mosaic_0001>

<bundles_post_ra>
// kernel: tpu_custom_call.1
= control target key start
LH: loop header
LB: loop body
LE: loop exit
PB: predicated region body
PF: predicated region fallthrough
CT: control target
= control target key end

     0   :  { %7 = vsyncpa [#allocation3], 0  ;;  %s249_s0 = inlined_call_operand.hbm [shape: f32[16,16], index: 0, kind: input, shape index: {}]   ;;  %s250_s1 = inlined_call_operand.hbm [shape: f32[16,1], index: 1, kind: input, shape index: {}]   ;;  %s251_s2 = inlined_call_operand.hbm [shape: f32[1,8,128], index: 2, kind: output, shape index: {}]  }
   0x1   :  { %8 = vsyncpa [#allocation6], 0 }
   0x2   :  { %9 = vsyncpa [#allocation4], 0  ;;  %s189_s9 = smov [#allocation2]   ;;  %s117_s13 = scalar_lea.hbm %s249_s0, 256 }
   0x3   :  { %s15_s10 = sshll.u32 %s189_s9, 4  ;;  %p118_p0 = scmp.ne.s32.totalorder %s249_s0, %s117_s13  ;;  %s16_s10 = int_to_ptr.vmem [resolvable:$true] %s15_s10 }
   0x4   :  { %p121_p1 = scmp.lt.u32.totalorder %s117_s13, %s249_s0 }
   0x6   :  { %p123_p2 = pnand %p121_p1, %p118_p0 }
   0x8   :  { %126 = shalt.err (!%p123_p2)
}
   0x9   :  { %s127_s18 = scalar_lea.vmem %s16_s10, 256  ;;  %p132_p4 = scmp.lt.s32.totalorder %s16_s10, %s16_s10 }
   0xa   :  { %p128_p3 = scmp.ne.s32.totalorder %s16_s10, %s127_s18  ;;  %p133_p5 = scmp.lt.s32.totalorder %s127_s18, %s127_s18 }
   0xc   :  { %p134_p6 = por %p133_p5, %p132_p4 }
   0xe   :  { %p135_p7 = pnand %p134_p6, %p128_p3 }
  0x10   :  { %138 = shalt.err (!%p135_p7)
}
  0x11   :  { %s190_s19 = smov 128   ;;  %s191_s20 = smov 8  }
  0x12   :  { %21 = dma.hbm_to_vmem [thread:$0]  %s249_s0, 256, %s16_s10, [#allocation3], %s190_s19, %s190_s19, %s191_s20  }
  0x13   :  { %s192_s23 = smov [#allocation5]   ;;  %s139_s27 = scalar_lea.hbm %s250_s1, 256 }
  0x14   :  { %s27_s24 = sshll.u32 %s192_s23, 4  ;;  %p140_p8 = scmp.ne.s32.totalorder %s250_s1, %s139_s27  ;;  %s28_s24 = int_to_ptr.vmem [resolvable:$true] %s27_s24 }
  0x15   :  { %p143_p9 = scmp.lt.u32.totalorder %s139_s27, %s250_s1 }
  0x17   :  { %p145_p10 = pnand %p143_p9, %p140_p8 }
  0x19   :  { %148 = shalt.err (!%p145_p10)
}
  0x1a   :  { %s149_s4 = scalar_lea.vmem %s28_s24, 256  ;;  %p154_p12 = scmp.lt.s32.totalorder %s28_s24, %s28_s24 }
  0x1b   :  { %p150_p11 = scmp.ne.s32.totalorder %s28_s24, %s149_s4  ;;  %p155_p13 = scmp.lt.s32.totalorder %s149_s4, %s149_s4 }
  0x1d   :  { %p156_p0 = por %p155_p13, %p154_p12 }
  0x1f   :  { %p157_p1 = pnand %p156_p0, %p150_p11 }
  0x21   :  { %160 = shalt.err (!%p157_p1)
}
  0x22   :  { %33 = dma.hbm_to_vmem [thread:$0]  %s250_s1, 256, %s28_s24, [#allocation6], %s190_s19, %s190_s19, %s191_s20  }
  0x23   :  { %183 = dma.done.wait [#allocation3], 256  }
  0x24   :  { %184 = vsyncadd [#allocation3], 4294967040 }
  0x25   :  { %185 = dma.done.wait [#allocation6], 256  }
  0x26   :  { %186 = vsyncadd [#allocation6], 4294967040  ;;  %vm42_vm0 = vcmask 130048   ;;  %v40_v0 = vld [vmem:[#allocation2] sm:$0xff]  ;;  %v41_v1 = vld [vmem:[#allocation2 + $0x8] sm:$0xff]  ;;  %vm71_vm1 = vcmask 7168  }
  0x27   :  { %v43_v2 = vsel %vm42_vm0, %v40_v0, -inf  ;;  %v46_v3 = vsel %vm42_vm0, %v41_v1, -inf  ;;  %v67_v20 = vld [vmem:[#allocation5] sm:$0xff]  ;;  %v68_v22 = vld [vmem:[#allocation5 + $0x8] sm:$0xff]  ;;  %s193_s1 = smov [#allocation7]  }
  0x28   :  { %44 = vmax.xlane.f32.xlu0 %v43_v2  ;;  %s92_s6 = sshll.u32 %s193_s1, 4  ;;  %s93_s6 = int_to_ptr.vmem [resolvable:$true] %s92_s6 }
  0x29   :  { %s161_s8 = scalar_lea.vmem %s93_s6, 128  ;;  %p166_p3 = scmp.lt.s32.totalorder %s93_s6, %s93_s6 }
  0x2a   :  { %p162_p2 = scmp.ne.s32.totalorder %s93_s6, %s161_s8  ;;  %p167_p4 = scmp.lt.s32.totalorder %s161_s8, %s161_s8 }
  0x2c   :  { %47 = vmax.xlane.f32.xlu0 %v46_v3  ;;  %p168_p5 = por %p167_p4, %p166_p3 }
  0x2e   :  { %p169_p6 = pnand %p168_p5, %p162_p2 }
  0xb5   :  { %v45_v4 = vpop.xlane.xlu0 %44 }
  0xb6   :  { %v49_v5 = vsub.f32 %v40_v0, %v45_v4 }
  0xb8   :  { %v51_v6 = vmul.f32 1.442695, %v49_v5 }
  0xb9   :  { %v48_v7 = vpop.xlane.xlu0 %47 }
  0xba   :  { %109 = vpow2.f32 %v51_v6  ;;  %v50_v8 = vsub.f32 %v41_v1, %v48_v7 }
  0xbc   :  { %v53_v9 = vmul.f32 1.442695, %v50_v8 }
  0xbe   :  { %111 = vpow2.f32 %v53_v9 }
  0xc4   :  { %v110_v10 = vpop.eup %109 }
  0xc5   :  { %v55_v11 = vsel %vm42_vm0, %v110_v10, 0.0 }
  0xc6   :  { %56 = vadd.xlane.f32.xlu1 %v55_v11 }
  0xc8   :  { %v112_v12 = vpop.eup %111 }
  0xc9   :  { %v58_v13 = vsel %vm42_vm0, %v112_v12, 0.0 }
  0xca   :  { %59 = vadd.xlane.f32.xlu1 %v58_v13 }
 0x153   :  { %v57_v14 = vpop.xlane.xlu1 %56 }
 0x154   :  { %113 = vlog2.f32 %v57_v14 }
 0x157   :  { %v60_v15 = vpop.xlane.xlu1 %59 }
 0x158   :  { %115 = vlog2.f32 %v60_v15 }
 0x15e   :  { %v114_v16 = vpop.eup %113 }
 0x15f   :  { %v62_v17 = vmul.f32 0.6931472, %v114_v16 }
 0x161   :  { %v65_v18 = vadd.f32 %v62_v17, %v45_v4 }
 0x162   :  { %v116_v19 = vpop.eup %115 }
 0x163   :  { %v64_v21 = vmul.f32 0.6931472, %v116_v19  ;;  %v69_v24 = vmul.f32 %v67_v20, %v65_v18 }
 0x165   :  { %v66_v23 = vadd.f32 %v64_v21, %v48_v7  ;;  %v72_v26 = vsel %vm71_vm1, %v69_v24, 0.0 }
 0x167   :  { %v70_v25 = vmul.f32 %v68_v22, %v66_v23 }
 0x169   :  { %v73_v27 = vsel %vm71_vm1, %v70_v25, 0.0 }
 0x16a   :  { %v74_v28 = vadd.f32 %v73_v27, %v72_v26 }
 0x16c   :  { %75 = vadd.xlane.f32.xlu0 %v74_v28 }
 0x1f9   :  { %v76_v29 = vpop.xlane.xlu0 %75 }
 0x1fa   :  { %v77_v30 = vrot.slane %v76_v29, 4 }
 0x1fc   :  { %v78_v31 = vadd.f32 %v77_v30, %v76_v29 }
 0x1fe   :  { %v79_v32 = vrot.slane %v78_v31, 2 }
 0x200   :  { %v80_v33 = vadd.f32 %v79_v32, %v78_v31 }
 0x202   :  { %v81_v34 = vrot.slane %v80_v33, 1 }
 0x204   :  { %v82_v35 = vadd.f32 %v81_v34, %v80_v33 }
 0x206   :  { %102 = vpush %v82_v35 }
 0x237   :  { %s103_s7 = spop %102 }
 0x238   :  { %v84_v36 = vstv %s103_s7 }
 0x239   :  { %85 = vst [vmem:[#allocation7] sm:$0xff] %v84_v36 }
 0x23a   :  { %172 = shalt.err (!%p169_p6)
}
 0x23b   :  { %s173_s11 = scalar_lea.hbm %s251_s2, 128 }
 0x23c   :  { %p174_p7 = scmp.ne.s32.totalorder %s251_s2, %s173_s11  ;;  %p177_p8 = scmp.lt.u32.totalorder %s173_s11, %s251_s2 }
 0x23e   :  { %p179_p9 = pnand %p177_p8, %p174_p7 }
 0x240   :  { %182 = shalt.err (!%p179_p9)
}
 0x241   :  { %95 = dma.vmem_to_hbm [thread:$0]  %s93_s6, 128, %s251_s2, [#allocation4]  }
 0x242   :  { %187 = dma.done.wait [#allocation4], 128  }
 0x243   :  { %188 = vsyncadd [#allocation4], 4294967168 }
 0x244   :  { %99 = vsyncpa [#allocation3], 1 }
 0x245   :  { %100 = vsyncpa [#allocation6], 1 }
 0x246   :  { %101 = vsyncpa [#allocation4], 1 }

</bundles_post_ra>
